<compile_context>
chip_gen: v5e
topology: v5e:2x2
jax: 0.10.0
libtpu: 0.0.40
codegen_flags: <defaults>
</compile_context>

<pallas_src>
import jax
import jax.numpy as jnp
from jax.experimental import pallas as pl
from jax.experimental.pallas import tpu as pltpu

N_NODES = 116   # fixed by the model (116-region brain graphs)
IN_DIM = 116
HID_DIM = 64
OUT_DIM = 116
PAD = 128       # lane-dense padded size for the 116-wide dims


# ------------------------------ Pallas kernel -------------------------------

def _gcn_fused_kernel(a_ref, x_ref, w1_ref, b1_ref, w2_ref, b2_ref, o_ref):
    """Fused GCNConv(116->64) + ReLU + GCNConv(64->116) for G graphs.

    a_ref : (G, PAD, PAD)   zero-padded normalized adjacency A_hat   (bf16)
    x_ref : (G, PAD, PAD)   zero-padded node features                (bf16)
    w1_ref: (PAD, HID_DIM)  (bf16), b1_ref: (1, HID_DIM)             (f32)
    w2_ref: (HID_DIM, PAD)  (bf16), b2_ref: (1, PAD)                 (f32)
    o_ref : (G, PAD, PAD)   (f32)
    """
    g = a_ref.shape[0]
    a = a_ref[...]                                           # (G, PAD, PAD) bf16

    # conv1: A_hat @ (X @ W1) + b1, then ReLU.
    # X @ W1 as one stacked matmul with M = G*128 (feeds the MXU properly).
    x_flat = x_ref[...].reshape(g * PAD, PAD)
    xw1 = jnp.dot(x_flat, w1_ref[...], preferred_element_type=jnp.float32)
    xw1 = xw1.reshape(g, PAD, HID_DIM).astype(jnp.bfloat16)
    h = jnp.einsum("gij,gjf->gif", a, xw1,
                   preferred_element_type=jnp.float32)
    h = jnp.maximum(h + b1_ref[...], 0.0)
    # dropout: eval-mode identity (training=False)

    # conv2, reassociated: (A_hat @ h) @ W2 + b2
    #   A@h is (128x128 @ 128x64); the 128x128x128 matmul is eliminated.
    ah = jnp.einsum("gij,gjf->gif", a, h.astype(jnp.bfloat16),
                    preferred_element_type=jnp.float32)
    ah_flat = ah.reshape(g * PAD, HID_DIM).astype(jnp.bfloat16)
    out = jnp.dot(ah_flat, w2_ref[...], preferred_element_type=jnp.float32)
    out = out.reshape(g, PAD, PAD) + b2_ref[...]
    o_ref[...] = out.astype(o_ref.dtype)


# ------------------------------ Pallas wrapper ------------------------------

def _graphs_per_step(batch):
    """Graphs per grid step: amortize step overhead while keeping >= 2 grid
    steps so dimension_semantics=('parallel',) splits work across the two
    TensorCores on v7x."""
    if batch <= 2:
        return 1
    return min(8, pl.cdiv(batch, 2))


def prepare_params(params):
    """Pad + cast weights ONCE (outside the per-call path)."""
    w1, b1 = params["conv1"]
    w2, b2 = params["conv2"]
    return {
        "w1": jnp.pad(w1, ((0, PAD - IN_DIM), (0, 0))).astype(jnp.bfloat16),
        "b1": b1.astype(jnp.float32),
        "w2": jnp.pad(w2, ((0, 0), (0, PAD - OUT_DIM))).astype(jnp.bfloat16),
        "b2": jnp.pad(b2, ((0, 0), (0, PAD - OUT_DIM))).astype(jnp.float32),
    }


def pad_graph_inputs(x, a_hat):
    """Pad node features / adjacency to the lane-dense 128 layout ONCE and
    cast to bf16 (exact-padding argument: A_hat padded rows/cols are zero)."""
    x_p = jnp.pad(x, ((0, 0), (0, PAD - N_NODES), (0, PAD - IN_DIM))
                  ).astype(jnp.bfloat16)
    a_p = jnp.pad(a_hat, ((0, 0), (0, PAD - N_NODES), (0, PAD - N_NODES))
                  ).astype(jnp.bfloat16)
    return x_p, a_p


def gcn_forward_padded(kparams, x_pad, a_pad):
    """Fused two-layer GCN on pre-padded bf16 inputs.

    x_pad, a_pad: [B, PAD, PAD] bf16.   Returns [B, PAD, PAD] f32 (padded);
    the real output is out[:, :116, :116].
    """
    b = x_pad.shape[0]
    g = _graphs_per_step(b)
    bp = pl.cdiv(b, g) * g
    if bp != b:  # pad the batch with zero graphs (discarded below)
        x_pad = jnp.pad(x_pad, ((0, bp - b), (0, 0), (0, 0)))
        a_pad = jnp.pad(a_pad, ((0, bp - b), (0, 0), (0, 0)))

    w1, b1, w2, b2 = kparams["w1"], kparams["b1"], kparams["w2"], kparams["b2"]

    # 4 matmuls of 2*128*128*64 FLOP per graph after reassociation.
    flops = int(bp) * 4 * 2 * PAD * PAD * HID_DIM
    bytes_accessed = (int(bp) * (2 * PAD * PAD * 2 + PAD * PAD * 4)
                      + (w1.size + w2.size) * 2 + (b1.size + b2.size) * 4)

    out_p = pl.pallas_call(
        _gcn_fused_kernel,
        out_shape=jax.ShapeDtypeStruct((bp, PAD, PAD), jnp.float32),
        grid=(bp // g,),
        in_specs=[
            pl.BlockSpec((g, PAD, PAD), lambda i: (i, 0, 0)),    # A_hat
            pl.BlockSpec((g, PAD, PAD), lambda i: (i, 0, 0)),    # X
            pl.BlockSpec((PAD, HID_DIM), lambda i: (0, 0)),      # W1 (resident)
            pl.BlockSpec((1, HID_DIM), lambda i: (0, 0)),        # b1 (resident)
            pl.BlockSpec((HID_DIM, PAD), lambda i: (0, 0)),      # W2 (resident)
            pl.BlockSpec((1, PAD), lambda i: (0, 0)),            # b2 (resident)
        ],
        out_specs=pl.BlockSpec((g, PAD, PAD), lambda i: (i, 0, 0)),
        compiler_params=pltpu.CompilerParams(
            dimension_semantics=("parallel",)),
        cost_estimate=pl.CostEstimate(
            flops=flops, transcendentals=0, bytes_accessed=bytes_accessed),
    )(a_pad, x_pad, w1, b1, w2, b2)

    return out_p[:b]


def gcn_forward(params, x, a_hat):
    """Convenience end-to-end forward: [B,116,116] x / A_hat -> [B*116, 116]."""
    kparams = prepare_params(params)
    x_p, a_p = pad_graph_inputs(x, a_hat)
    out_p = gcn_forward_padded(kparams, x_p, a_p)
    return out_p[:, :N_NODES, :OUT_DIM].reshape(-1, OUT_DIM)


# --------------------------- params / graph glue ----------------------------

def init_params(key):
    def lin(k, fin, fout, scale=0.1):
        k1, k2 = jax.random.split(k)
        w = scale * jax.random.normal(k1, (fin, fout), jnp.float32)
        b = scale * jax.random.normal(k2, (1, fout), jnp.float32)
        return (w, b)

    k1, k2 = jax.random.split(key)
    return {
        "conv1": lin(k1, IN_DIM, HID_DIM),
        "conv2": lin(k2, HID_DIM, OUT_DIM),
    }


def normalize_adj(a):
    # A_hat = D^-1/2 (A + I) D^-1/2   (GCNConv default normalization)
    n = a.shape[-1]
    a = a + jnp.eye(n, dtype=a.dtype)
    d = jnp.sum(a, axis=-1)
    dinv = 1.0 / jnp.sqrt(jnp.maximum(d, 1e-12))
    return a * dinv[..., :, None] * dinv[..., None, :]


# ----------------------------------- main ------------------------------------

if __name__ == "__main__":
    key = jax.random.PRNGKey(0)
    k_param, k_x, k_adj = jax.random.split(key, 3)

    B = 2  # number of graphs in the batch
    params = init_params(k_param)

    # Node features: each graph has 116 nodes with 116-dim features.
    x = jax.random.normal(k_x, (B, N_NODES, IN_DIM), jnp.float32)

    # Deterministic random sparse symmetric adjacency; normalized once.
    a_rand = (jax.random.uniform(k_adj, (B, N_NODES, N_NODES)) < 0.05
              ).astype(jnp.float32)
    a_sym = jnp.maximum(a_rand, jnp.swapaxes(a_rand, 1, 2))
    a_hat = normalize_adj(a_sym)

    # One-time prep (padding / bf16 cast) kept out of the per-step call path.
    kparams = jax.tree.map(jax.block_until_ready, prepare_params(params))
    x_p, a_p = pad_graph_inputs(x, a_hat)
    x_p, a_p = jax.block_until_ready(x_p), jax.block_until_ready(a_p)

    fwd = jax.jit(gcn_forward_padded)
    out_p = fwd(kparams, x_p, a_p)
    jax.block_until_ready(out_p)

    out = out_p[:, :N_NODES, :OUT_DIM].reshape(B * N_NODES, OUT_DIM)

    # Pure-JAX f32 reference (dense GCN math, eval-mode dropout).
    def ref_forward(p, x_, a_):
        w1, b1 = p["conv1"]
        w2, b2 = p["conv2"]
        h = jnp.maximum(jnp.einsum("bij,bjf->bif", a_, x_ @ w1) + b1, 0.0)
        o = jnp.einsum("bij,bjf->bif", a_, h @ w2) + b2
        return o.reshape(-1, OUT_DIM)

    ref = ref_forward(params, x, a_hat)

    assert out.shape == (B * N_NODES, OUT_DIM)
    assert bool(jnp.all(jnp.isfinite(out)))
    assert bool(jnp.allclose(out, ref, rtol=2e-2, atol=2e-2))
    print("KERNEL_OK")
</pallas_src>

<mosaic_0001>
module attributes {stable_mosaic.version = 11 : i64} {
  func.func @_gcn_fused_kernel(%arg0: i32, %arg1: memref<1x128x128xbf16, #tpu.memory_space<vmem>>, %arg2: memref<1x128x128xbf16, #tpu.memory_space<vmem>>, %arg3: memref<128x64xbf16, #tpu.memory_space<vmem>>, %arg4: memref<1x64xf32, #tpu.memory_space<vmem>>, %arg5: memref<64x128xbf16, #tpu.memory_space<vmem>>, %arg6: memref<1x128xf32, #tpu.memory_space<vmem>>, %arg7: memref<1x128x128xf32, #tpu.memory_space<vmem>>) attributes {dimension_semantics = [#tpu.dimension_semantics<parallel>], iteration_bounds = array<i64: 2>, scalar_prefetch = 0 : i64, scratch_operands = 0 : i64, tpu.core_type = #tpu.core_type<tc>, window_params = [{transform_indices = @transform_0, window_bounds = array<i64: 1, 128, 128>}, {transform_indices = @transform_1, window_bounds = array<i64: 1, 128, 128>}, {pipeline_mode = #tpu.pipeline_mode<synchronous>, transform_indices = @transform_2, window_bounds = array<i64: 128, 64>}, {pipeline_mode = #tpu.pipeline_mode<synchronous>, transform_indices = @transform_3, window_bounds = array<i64: 1, 64>}, {pipeline_mode = #tpu.pipeline_mode<synchronous>, transform_indices = @transform_4, window_bounds = array<i64: 64, 128>}, {pipeline_mode = #tpu.pipeline_mode<synchronous>, transform_indices = @transform_5, window_bounds = array<i64: 1, 128>}, {transform_indices = @transform_6, window_bounds = array<i64: 1, 128, 128>}]} {
    %c0 = arith.constant 0 : index
    %c0_0 = arith.constant 0 : index
    %c0_1 = arith.constant 0 : index
    %0 = vector.load %arg1[%c0, %c0_0, %c0_1] : memref<1x128x128xbf16, #tpu.memory_space<vmem>>, vector<1x128x128xbf16>
    %c0_2 = arith.constant 0 : index
    %c0_3 = arith.constant 0 : index
    %c0_4 = arith.constant 0 : index
    %1 = vector.load %arg2[%c0_2, %c0_3, %c0_4] : memref<1x128x128xbf16, #tpu.memory_space<vmem>>, vector<1x128x128xbf16>
    %2 = vector.shape_cast %1 : vector<1x128x128xbf16> to vector<128x128xbf16>
    %c0_5 = arith.constant 0 : index
    %c0_6 = arith.constant 0 : index
    %3 = vector.load %arg3[%c0_5, %c0_6] : memref<128x64xbf16, #tpu.memory_space<vmem>>, vector<128x64xbf16>
    %cst = arith.constant dense<0.000000e+00> : vector<128x64xf32>
    %4 = tpu.matmul %2, %3, %cst {dimension_numbers = #tpu.dot_dimension_numbers<[1], [0], [0], [1], [0, 0, 1, 1], [], []>} : vector<128x128xbf16>, vector<128x64xbf16>, vector<128x64xf32> -> vector<128x64xf32>
    %5 = vector.shape_cast %4 : vector<128x64xf32> to vector<1x128x64xf32>
    %6 = arith.truncf %5 : vector<1x128x64xf32> to vector<1x128x64xbf16>
    "tpu.trace_start"() <{level = 10 : i32, message = "gij,gjf->gif"}> : () -> ()
    %cst_7 = arith.constant dense<0.000000e+00> : vector<1x128x64xf32>
    %7 = tpu.matmul %0, %6, %cst_7 {dimension_numbers = #tpu.dot_dimension_numbers<[2], [1], [1], [2], [0, 0, 0, 1, 1, 2], [0], [0]>} : vector<1x128x128xbf16>, vector<1x128x64xbf16>, vector<1x128x64xf32> -> vector<1x128x64xf32>
    "tpu.trace_stop"() : () -> ()
    %c0_8 = arith.constant 0 : index
    %c0_9 = arith.constant 0 : index
    %8 = vector.load %arg4[%c0_8, %c0_9] : memref<1x64xf32, #tpu.memory_space<vmem>>, vector<1x64xf32>
    %9 = vector.shape_cast %8 : vector<1x64xf32> to vector<1x1x64xf32>
    %10 = vector.broadcast %9 : vector<1x1x64xf32> to vector<1x128x64xf32>
    %11 = arith.addf %7, %10 : vector<1x128x64xf32>
    %cst_10 = arith.constant 0.000000e+00 : f32
    %12 = vector.broadcast %cst_10 : f32 to vector<1x128x64xf32>
    %13 = arith.maximumf %11, %12 : vector<1x128x64xf32>
    %14 = arith.truncf %13 : vector<1x128x64xf32> to vector<1x128x64xbf16>
    "tpu.trace_start"() <{level = 10 : i32, message = "gij,gjf->gif"}> : () -> ()
    %cst_11 = arith.constant dense<0.000000e+00> : vector<1x128x64xf32>
    %15 = tpu.matmul %0, %14, %cst_11 {dimension_numbers = #tpu.dot_dimension_numbers<[2], [1], [1], [2], [0, 0, 0, 1, 1, 2], [0], [0]>} : vector<1x128x128xbf16>, vector<1x128x64xbf16>, vector<1x128x64xf32> -> vector<1x128x64xf32>
    "tpu.trace_stop"() : () -> ()
    %16 = vector.shape_cast %15 : vector<1x128x64xf32> to vector<128x64xf32>
    %17 = arith.truncf %16 : vector<128x64xf32> to vector<128x64xbf16>
    %c0_12 = arith.constant 0 : index
    %c0_13 = arith.constant 0 : index
    %18 = vector.load %arg5[%c0_12, %c0_13] : memref<64x128xbf16, #tpu.memory_space<vmem>>, vector<64x128xbf16>
    %cst_14 = arith.constant dense<0.000000e+00> : vector<128x128xf32>
    %19 = tpu.matmul %17, %18, %cst_14 {dimension_numbers = #tpu.dot_dimension_numbers<[1], [0], [0], [1], [0, 0, 1, 1], [], []>} : vector<128x64xbf16>, vector<64x128xbf16>, vector<128x128xf32> -> vector<128x128xf32>
    %20 = vector.shape_cast %19 : vector<128x128xf32> to vector<1x128x128xf32>
    %c0_15 = arith.constant 0 : index
    %c0_16 = arith.constant 0 : index
    %21 = vector.load %arg6[%c0_15, %c0_16] : memref<1x128xf32, #tpu.memory_space<vmem>>, vector<1x128xf32>
    %22 = vector.shape_cast %21 : vector<1x128xf32> to vector<1x1x128xf32>
    %23 = vector.broadcast %22 : vector<1x1x128xf32> to vector<1x128x128xf32>
    %24 = arith.addf %20, %23 : vector<1x128x128xf32>
    %c0_17 = arith.constant 0 : index
    %c0_18 = arith.constant 0 : index
    %c0_19 = arith.constant 0 : index
    %25 = vector.load %arg7[%c0_17, %c0_18, %c0_19] : memref<1x128x128xf32, #tpu.memory_space<vmem>>, vector<1x128x128xf32>
    tpu.vector_store %arg7[%c0_17, %c0_18, %c0_19], %24 {strides = array<i32>} : memref<1x128x128xf32, #tpu.memory_space<vmem>>, vector<1x128x128xf32>,
    return
  }
  func.func @transform_0(%arg0: i32) -> (i32, i32, i32) {
    %c0_i32 = arith.constant 0 : i32
    %c0_i32_0 = arith.constant 0 : i32
    %c0_i32_1 = arith.constant 0 : i32
    return %arg0, %c0_i32, %c0_i32_0 : i32, i32, i32
  }
  func.func @transform_1(%arg0: i32) -> (i32, i32, i32) {
    %c0_i32 = arith.constant 0 : i32
    %c0_i32_0 = arith.constant 0 : i32
    %c0_i32_1 = arith.constant 0 : i32
    return %arg0, %c0_i32, %c0_i32_0 : i32, i32, i32
  }
  func.func @transform_2(%arg0: i32) -> (i32, i32) {
    %c0_i32 = arith.constant 0 : i32
    %c0_i32_0 = arith.constant 0 : i32
    %c0_i32_1 = arith.constant 0 : i32
    return %c0_i32, %c0_i32_0 : i32, i32
  }
  func.func @transform_3(%arg0: i32) -> (i32, i32) {
    %c0_i32 = arith.constant 0 : i32
    %c0_i32_0 = arith.constant 0 : i32
    %c0_i32_1 = arith.constant 0 : i32
    return %c0_i32, %c0_i32_0 : i32, i32
  }
  func.func @transform_4(%arg0: i32) -> (i32, i32) {
    %c0_i32 = arith.constant 0 : i32
    %c0_i32_0 = arith.constant 0 : i32
    %c0_i32_1 = arith.constant 0 : i32
    return %c0_i32, %c0_i32_0 : i32, i32
  }
  func.func @transform_5(%arg0: i32) -> (i32, i32) {
    %c0_i32 = arith.constant 0 : i32
    %c0_i32_0 = arith.constant 0 : i32
    %c0_i32_1 = arith.constant 0 : i32
    return %c0_i32, %c0_i32_0 : i32, i32
  }
  func.func @transform_6(%arg0: i32) -> (i32, i32, i32) {
    %c0_i32 = arith.constant 0 : i32
    %c0_i32_0 = arith.constant 0 : i32
    %c0_i32_1 = arith.constant 0 : i32
    return %arg0, %c0_i32, %c0_i32_0 : i32, i32, i32
  }
}

</mosaic_0001>

<bundles_post_ra>
// kernel: gcn_forward_padded.1
= control target key start
LH: loop header
LB: loop body
LE: loop exit
PB: predicated region body
PF: predicated region fallthrough
CT: control target
= control target key end

     0   :  { %s1775_s0 = inlined_call_operand.hbm [shape: bf16[2,128,128], index: 0, kind: input, shape index: {}]   ;;  %s1776_s1 = inlined_call_operand.hbm [shape: bf16[2,128,128], index: 1, kind: input, shape index: {}]   ;;  %s1777_s2 = inlined_call_operand.vmem [shape: bf16[128,64], index: 2, kind: input, shape index: {}]   ;;  %s1778_s3 = inlined_call_operand.vmem [shape: f32[1,64], index: 3, kind: input, shape index: {}]   ;;  %s1779_s4 = inlined_call_operand.vmem [shape: bf16[64,128], index: 4, kind: input, shape index: {}]   ;;  %s1780_s5 = inlined_call_operand.vmem [shape: f32[1,128], index: 5, kind: input, shape index: {}]   ;;  %s1781_s6 = inlined_call_operand.hbm [shape: f32[2,128,128], index: 6, kind: output, shape index: {}]  }
   0x1   :  { %1787 = sst [smem:[#allocation14_spill]] %s1775_s0 }
   0x2   :  { %11 = vsyncpa [#allocation3], 0 }
   0x3   :  { %13 = vsyncpa [#allocation3 + $0x1], 0 }
   0x4   :  { %14 = vsyncpa [#allocation6], 0 }
   0x5   :  { %16 = vsyncpa [#allocation6 + $0x1], 0 }
   0x6   :  { %17 = vsyncpa [#allocation4], 0 }
   0x7   :  { %19 = vsyncpa [#allocation4 + $0x1], 0  ;;  %s1461_s21 = smov 0   ;;  %s1463_s22 = smov 0  }
   0x8   :  { %s1465_s23 = smov 0   ;;  %s1467_s24 = smov 0  }
   0x9 LB: > { %1788 = sst [smem:[#allocation11_spill]] %s1416_s23  ;;  %s1482_s25 = sadd.s32 4294967295, %s1420_s24   ;;  %s1420_s24 = sphi %s1467_s24, %s1801_s24   ;;  %s1416_s23 = sphi %s1465_s23, %s1803_s23   ;;  %s1412_s22 = sphi %s1463_s22, %s1805_s22   ;;  %s1408_s21 = sphi %s1461_s21, %s1804_s21  }
   0xa   : > { %s1064_s26 = sadd.s32 4294967294, %s1420_s24   ;;  %s1486_s27 = sadd.s32 1, %s1420_s24  }
   0xb   : > { %1789 = sst [smem:[#allocation12_spill]] %s1486_s27  ;;  %s32_s28 = sadd.s32 1, %s1416_s23 }
   0xc   : > { %s29_s29 = ssub.s32 %s1420_s24, %s1486_s27  ;;  %p39_p0 = scmp.ne.s32.totalorder %s1416_s23, %s1412_s22 }
   0xd   : > { %p30_p1 = scmp.eq.s32.totalorder %s29_s29, 0  ;;  %p40_p2 = scmp.eq.s32.totalorder %s1420_s24, 0 }
   0xe   : > { %p45_p3 = scmp.ne.s32.totalorder %s1412_s22, %s1408_s21  ;;  %p46_p4 = scmp.eq.s32.totalorder %s1482_s25, 0 }
   0xf   : > { %s1498_s30 = scalar_select %p30_p1, %s1416_s23, %s32_s28  }
  0x10   : > { %p1500_p5 = por %p40_p2, %p39_p0  ;;  %p1504_p6 = por %p46_p4, %p45_p3 }
  0x11   : > { %1790 = sst [smem:[#allocation13_spill]] %s1498_s30  ;;  %p179_p7 = scmp.eq.s32.totalorder %s1482_s25, 1 }
  0x12   : > { %p185_p8 = scmp.eq.s32.totalorder %s1064_s26, 1  ;;  %p1250_p10 = scmp.lt.s32.totalorder %s1420_s24, 2 }
  0x13   : > { %p1511_p11 = por %p179_p7, %p39_p0  ;;  %s1520_s11 = sand.u32 1, %s1416_s23  }
  0x14   : > { %p1515_p12 = por %p185_p8, %p45_p3  ;;  %s1783_s12 = sshll.u32 %s1420_s24, 6 }
  0x15   : > { %s1782_s13 = sshll.u32 %s1520_s11, 6  ;;  %s1795_s0 = sld [smem:[#allocation14_spill]] }
  0x16   : > { %s221_s18 = scalar_lea.vmem [#allocation2], %s1782_s13  ;;  %p1533_p13 = pnand %p1250_p10, %p1500_p5 }
  0x17   : > { %s229_s19 = sshll.u32 %s221_s18, 4  ;;  %p1073_p0 = scmp.ge.s32.totalorder %s1420_s24, 1  ;;  %s230_s19 = int_to_ptr.vmem [resolvable:$true] %s229_s19 }
  0x18   : > { %p259_p1 = scmp.lt.s32.totalorder %s1420_s24, 3  ;;  %s218_s26 = scalar_lea.sflag [#allocation3], %s1520_s11 }
  0x19   : > { %p1294_p3 = pneg %p1533_p13 }
  0x1b   : > { %s226_s16 = scalar_lea.hbm %s1795_s0, %s1783_s12  ;;  %s1297_s15 = scalar_lea.hbm %s1795_s0, 128 }
  0x1c   : > { %s227_s17 = sshll.u32 %s226_s16, 4  ;;  %s228_s17 = int_to_ptr.hbm [resolvable:$true] %s227_s17 }
  0x1d   : > { %s1290_s28 = sshra.s32 %s228_s17, 4  ;;  %s1291_s28 = int_to_ptr.hbm [resolvable:$true] %s1290_s28 }
  0x1e   : > { %s1292_s29 = scalar_lea.hbm %s1291_s28, 64  ;;  %p1298_p5 = scmp.lt.s32.totalorder %s1291_s28, %s1795_s0 }
  0x1f   : > { %p1293_p2 = scmp.ne.s32.totalorder %s1291_s28, %s1292_s29  ;;  %p1299_p8 = scmp.lt.s32.totalorder %s1297_s15, %s1292_s29 }
  0x21   : > { %p1295_p4 = pnand %p1294_p3, %p1293_p2  ;;  %p1300_p10 = por %p1299_p8, %p1298_p5 }
  0x23   : > { %p1296_p7 = pneg %p1295_p4 }
  0x25   : > { %p1301_p9 = pnand %p1300_p10, %p1296_p7 }
  0x27   : > { %1304 = shalt.err (!%p1301_p9)
}
  0x28   : > { %s1422_s13 = smov 64   ;;  %s1423_s12 = smov 4  }
  0x29   : > { %1242 = dma.hbm_to_vmem [thread:$0]  (!%p1533_p13), %s228_s17, 1024, %s230_s19, %s218_s26, %s1422_s13, %s1422_s13, %s1423_s12  }
  0x2a   : > { %p1557_p2 = pnand %p1073_p0, %p259_p1  ;;  %s1798_s28 = sshll.u32 %s1420_s24, 6 }
  0x2b   : > { %s248_s15 = scalar_lea.hbm %s1776_s1, %s1798_s28  ;;  %s1799_s18 = sshll.u32 %s1520_s11, 6 }
  0x2c   : > { %s249_s16 = sshll.u32 %s248_s15, 4  ;;  %s243_s0 = scalar_lea.vmem [#allocation5], %s1799_s18  ;;  %s250_s16 = int_to_ptr.hbm [resolvable:$true] %s249_s16 }
  0x2d   : > { %s251_s30 = sshll.u32 %s243_s0, 4  ;;  %s240_s23 = scalar_lea.sflag [#allocation6], %s1520_s11  ;;  %s252_s30 = int_to_ptr.vmem [resolvable:$true] %s251_s30 }
  0x2e   : > { %s1320_s27 = sshra.s32 %s250_s16, 4  ;;  %s1327_s29 = scalar_lea.hbm %s1776_s1, 128  ;;  %s1321_s27 = int_to_ptr.hbm [resolvable:$true] %s1320_s27 }
  0x2f   : > { %s1322_s17 = scalar_lea.hbm %s1321_s27, 64  ;;  %p1328_p4 = scmp.lt.s32.totalorder %s1321_s27, %s1776_s1 }
  0x30   : > { %p1323_p9 = scmp.ne.s32.totalorder %s1321_s27, %s1322_s17  ;;  %p1329_p7 = scmp.lt.s32.totalorder %s1327_s29, %s1322_s17 }
  0x32   : > { %p1325_p0 = pnand %p1323_p9, %p1294_p3  ;;  %p1330_p5 = por %p1329_p7, %p1328_p4 }
  0x34   : > { %p1326_p1 = pneg %p1325_p0 }
  0x36   : > { %p1331_p8 = pnand %p1330_p5, %p1326_p1 }
  0x38   : > { %1334 = shalt.err (!%p1331_p8)
}
  0x39   : > { %1245 = dma.hbm_to_vmem [thread:$0]  (!%p1533_p13), %s250_s16, 1024, %s252_s30, %s240_s23, %s1422_s13, %s1422_s13, %s1423_s12  }
  0x3a   : > { %263 = sbr.rel (%p1557_p2) target bundleno = 1068 (0x42c), region = 44  ;;  %s1583_s0 = sand.u32 (!%p1557_p2), 1, %s1412_s22  }
  0x3b   : > { %s1074_s11 = sshll.u32 (!%p1557_p2), %s1583_s0, 6  ;;  %s266_s15 = scalar_lea.sflag (!%p1557_p2), [#allocation3], %s1583_s0 }
  0x3c   : > { %s1587_s18 = scalar_lea.vmem (!%p1557_p2), [#allocation2], %s1074_s11 }
  0x3f   : > { %1395 = dma.done.wait (%p1504_p6), %s266_s15, 1024  }
  0x40   : > { %1397 = vsyncadd (%p1504_p6), %s266_s15, 4294966272  ;;  %s276_s23 = scalar_lea.sflag [#allocation6], %s1583_s0  ;;  %s1594_s27 = scalar_lea.vmem [#allocation5], %s1074_s11 }
  0x41   : > { %1399 = dma.done.wait (%p1504_p6), %s276_s23, 1024  }
  0x42   : > { %1401 = vsyncadd (%p1504_p6), %s276_s23, 4294966272  ;;  %v1227_v0 = vld [vmem:[%s1777_s2 + $0x38] sm:$0xff]  ;;  %v1226_v1 = vld [vmem:[%s1777_s2 + $0x30] sm:$0xff]  ;;  %vm842_vm0 = vcmask 523264   ;;  %s1076_s19 = sshll.u32 %s1583_s0, 7  ;;  %s1232_s14 = sshll.u32 %s1482_s25, 7 }
  0x43   : > { %459 = vmatpush.bf16.msra.mxu0 %v1227_v0  ;;  %v1225_v2 = vld [vmem:[%s1777_s2 + $0x28] sm:$0xff]  ;;  %v1224_v3 = vld [vmem:[%s1777_s2 + $0x20] sm:$0xff]  ;;  %v1223_v4 = vld [vmem:[%s1777_s2 + $0x18] sm:$0xff]  ;;  %s1723_s28 = scalar_lea.vmem [#allocation7], %s1076_s19  ;;  %s964_s23 = scalar_lea.hbm %s1781_s6, %s1232_s14 }
  0x44   : > { %v1222_v5 = vld [vmem:[%s1777_s2 + $0x10] sm:$0xff]  ;;  %v1221_v6 = vld [vmem:[%s1777_s2 + $0x8] sm:$0xff]  ;;  %v1220_v7 = vld [vmem:[%s1777_s2] sm:$0xff]  ;;  %s967_s30 = sshll.u32 %s964_s23, 4  ;;  %s1370_s7 = scalar_lea.hbm %s1781_s6, 256  ;;  %s968_s30 = int_to_ptr.hbm [resolvable:$true] %s967_s30 }
  0x45   : > { %v1212_v8 = vld [vmem:[%s1594_s27] sm:$0xff]  ;;  %v1213_v9 = vld [vmem:[%s1594_s27 + $0x8] sm:$0xff]  ;;  %v1214_v10 = vld [vmem:[%s1594_s27 + $0x10] sm:$0xff]  ;;  %s1364_s12 = sshra.s32 %s968_s30, 4  ;;  %s1365_s12 = int_to_ptr.hbm [resolvable:$true] %s1364_s12 }
  0x46   : > { %v1215_v11 = vld [vmem:[%s1594_s27 + $0x18] sm:$0xff]  ;;  %v1216_v12 = vld [vmem:[%s1594_s27 + $0x20] sm:$0xff]  ;;  %v1217_v13 = vld [vmem:[%s1594_s27 + $0x28] sm:$0xff]  ;;  %s1366_s13 = scalar_lea.hbm %s1365_s12, 128  ;;  %p1371_p10 = scmp.lt.s32.totalorder %s1365_s12, %s1781_s6 }
  0x47   : > { %460 = vmatpush.bf16.msra.mxu0 %v1226_v1  ;;  %v1218_v14 = vld [vmem:[%s1594_s27 + $0x30] sm:$0xff]  ;;  %v1219_v15 = vld [vmem:[%s1594_s27 + $0x38] sm:$0xff]  ;;  %s965_s27 = sshll.u32 %s1723_s28, 4  ;;  %p1367_p6 = scmp.ne.s32.totalorder %s1365_s12, %s1366_s13  ;;  %s966_s27 = int_to_ptr.vmem [resolvable:$true] %s965_s27 }
  0x48   : > { %p1372_p2 = scmp.lt.s32.totalorder %s1370_s7, %s1366_s13 }
  0x49   : > { %p1368_p13 = pnand %p1367_p6, %p1511_p11 }
  0x4a   : > { %p1373_p9 = por %p1372_p2, %p1371_p10 }
  0x4b   : > { %461 = vmatpush.bf16.msra.mxu0 %v1225_v2  ;;  %p1369_p3 = pneg %p1368_p13 }
  0x4d   : > { %p1374_p0 = pnand %p1373_p9, %p1369_p3 }
  0x4f   : > { %462 = vmatpush.bf16.msra.mxu0 %v1224_v3 }
  0x53   : > { %463 = vmatpush.bf16.msra.mxu0 %v1223_v4 }
  0x57   : > { %464 = vmatpush.bf16.msra.mxu0 %v1222_v5 }
  0x5b   : > { %465 = vmatpush.bf16.msra.mxu0 %v1221_v6 }
  0x5f   : > { %466 = vmatpush.bf16.msra.mxu0 %v1220_v7 }
  0x62   : > { %467 = vmatmul.bf16.vlgmr.msra.gmra.mxu0 %v1212_v8  ;;  %v1633_v8 = vld [vmem:[%s1587_s18] sm:$0xff] }
  0x72   : > { %472 = vmatmul.bf16.gmra.mxu0 %v1213_v9  ;;  %v1637_v9 = vld [vmem:[%s1587_s18 + $0x8] sm:$0xff] }
  0x82   : > { %477 = vmatmul.bf16.gmra.mxu0 %v1214_v10  ;;  %v1641_v10 = vld [vmem:[%s1587_s18 + $0x10] sm:$0xff] }
  0x92   : > { %482 = vmatmul.bf16.gmra.mxu0 %v1215_v11  ;;  %v1645_v11 = vld [vmem:[%s1587_s18 + $0x18] sm:$0xff] }
  0xa2   : > { %487 = vmatmul.bf16.gmra.mxu0 %v1216_v12  ;;  %v1649_v12 = vld [vmem:[%s1587_s18 + $0x20] sm:$0xff] }
  0xb2   : > { %492 = vmatmul.bf16.gmra.mxu0 %v1217_v13  ;;  %v1653_v13 = vld [vmem:[%s1587_s18 + $0x28] sm:$0xff] }
  0xc2   : > { %497 = vmatmul.bf16.gmra.mxu0 %v1218_v14  ;;  %v1657_v14 = vld [vmem:[%s1587_s18 + $0x30] sm:$0xff] }
  0xd2   : > { %502 = vmatmul.bf16.gmra.mxu0 %v1219_v15  ;;  %v1661_v15 = vld [vmem:[%s1587_s18 + $0x38] sm:$0xff]  ;;  %s953_s18 = scalar_lea.sflag [#allocation4], %s1583_s0 }
  0xdf   : > { %v468_v16 = vpop.f32.mrf.mxu0 }
  0xe0   : > { %v508_v17 = vpack.c.bf16 %v468_v16, %v468_v16  ;;  %v1667_v16 = vld [vmem:[%s1778_s3] ss:$0 sm:$0xff] }
  0xe2   : > { %v592_v20 = vunpack.c.l.b16 %v508_v17 }
  0xe7   : > { %v470_v18 = vpop.f32.mrf.mxu0 }
  0xe8   : > { %v509_v19 = vpack.c.bf16 %v470_v18, %v470_v18 }
  0xea   : > { %v593_v21 = vunpack.c.l.b16 %v509_v19 }
  0xec   : > { %v608_v22 = vpack.c.b16 %v593_v21, %v592_v20 }
  0xef   : > { %v473_v23 = vpop.f32.mrf.mxu0 }
  0xf0   : > { %v510_v24 = vpack.c.bf16 %v473_v23, %v473_v23 }
  0xf2   : > { %v594_v27 = vunpack.c.l.b16 %v510_v24 }
  0xf7   : > { %v475_v25 = vpop.f32.mrf.mxu0 }
  0xf8   : > { %v511_v26 = vpack.c.bf16 %v475_v25, %v475_v25 }
  0xfa   : > { %v595_v28 = vunpack.c.l.b16 %v511_v26 }
  0xfc   : > { %v609_v29 = vpack.c.b16 %v595_v28, %v594_v27 }
  0xff   : > { %v478_v30 = vpop.f32.mrf.mxu0 }
 0x100   : > { %v512_v31 = vpack.c.bf16 %v478_v30, %v478_v30 }
 0x102   : > { %v596_v34 = vunpack.c.l.b16 %v512_v31 }
 0x107   : > { %v480_v32 = vpop.f32.mrf.mxu0 }
 0x108   : > { %v513_v33 = vpack.c.bf16 %v480_v32, %v480_v32 }
 0x10a   : > { %v597_v35 = vunpack.c.l.b16 %v513_v33 }
 0x10c   : > { %v610_v36 = vpack.c.b16 %v597_v35, %v596_v34 }
 0x10f   : > { %v483_v37 = vpop.f32.mrf.mxu0 }
 0x110   : > { %v514_v38 = vpack.c.bf16 %v483_v37, %v483_v37 }
 0x112   : > { %v598_v41 = vunpack.c.l.b16 %v514_v38 }
 0x117   : > { %v485_v39 = vpop.f32.mrf.mxu0 }
 0x118   : > { %v515_v40 = vpack.c.bf16 %v485_v39, %v485_v39 }
 0x11a   : > { %v599_v42 = vunpack.c.l.b16 %v515_v40 }
 0x11c   : > { %v611_v43 = vpack.c.b16 %v599_v42, %v598_v41 }
 0x11f   : > { %v488_v44 = vpop.f32.mrf.mxu0 }
 0x120   : > { %v516_v2 = vpack.c.bf16 %v488_v44, %v488_v44 }
 0x122   : > { %v600_v6 = vunpack.c.l.b16 %v516_v2 }
 0x127   : > { %v490_v45 = vpop.f32.mrf.mxu0 }
 0x128   : > { %v517_v63 = vpack.c.bf16 %v490_v45, %v490_v45 }
 0x12a   : > { %v601_v4 = vunpack.c.l.b16 %v517_v63 }
 0x12c   : > { %v612_v7 = vpack.c.b16 %v601_v4, %v600_v6 }
 0x12f   : > { %v493_v46 = vpop.f32.mrf.mxu0 }
 0x130   : > { %v518_v61 = vpack.c.bf16 %v493_v46, %v493_v46 }
 0x132   : > { %v602_v3 = vunpack.c.l.b16 %v518_v61 }
 0x137   : > { %v495_v47 = vpop.f32.mrf.mxu0 }
 0x138   : > { %v519_v58 = vpack.c.bf16 %v495_v47, %v495_v47 }
 0x13a   : > { %v603_v0 = vunpack.c.l.b16 %v519_v58 }
 0x13c   : > { %v613_v5 = vpack.c.b16 %v603_v0, %v602_v3 }
 0x13f   : > { %v498_v48 = vpop.f32.mrf.mxu0 }
 0x140   : > { %v520_v55 = vpack.c.bf16 %v498_v48, %v498_v48 }
 0x142   : > { %v604_v62 = vunpack.c.l.b16 %v520_v55 }
 0x147   : > { %v500_v49 = vpop.f32.mrf.mxu0 }
 0x148   : > { %v521_v53 = vpack.c.bf16 %v500_v49, %v500_v49 }
 0x14a   : > { %v605_v59 = vunpack.c.l.b16 %v521_v53 }
 0x14c   : > { %v614_v1 = vpack.c.b16 %v605_v59, %v604_v62 }
 0x14f   : > { %v503_v50 = vpop.f32.mrf.mxu0 }
 0x150   : > { %v522_v51 = vpack.c.bf16 %v503_v50, %v503_v50 }
 0x152   : > { %v606_v56 = vunpack.c.l.b16 %v522_v51 }
 0x157   : > { %v505_v52 = vpop.f32.mrf.mxu0 }
 0x158   : > { %v523_v54 = vpack.c.bf16 %v505_v52, %v505_v52 }
 0x15a   : > { %v607_v57 = vunpack.c.l.b16 %v523_v54 }
 0x15c   : > { %v615_v60 = vpack.c.b16 %v607_v57, %v606_v56 }
 0x15e   : > { %624 = vmatpush.bf16.msra.mxu1 %v615_v60 }
 0x162   : > { %625 = vmatpush.bf16.msra.mxu1 %v614_v1 }
 0x166   : > { %626 = vmatpush.bf16.msra.mxu1 %v613_v5 }
 0x16a   : > { %627 = vmatpush.bf16.msra.mxu1 %v612_v7 }
 0x16e   : > { %628 = vmatpush.bf16.msra.mxu1 %v611_v43 }
 0x172   : > { %629 = vmatpush.bf16.msra.mxu1 %v610_v36 }
 0x176   : > { %630 = vmatpush.bf16.msra.mxu1 %v609_v29 }
 0x17a   : > { %631 = vmatpush.bf16.msra.mxu1 %v608_v22 }
 0x17d   : > { %632 = vmatmul.bf16.vlgmr.msra.gmra.mxu1 %v1633_v8 }
 0x18d   : > { %637 = vmatmul.bf16.gmra.mxu1 %v1637_v9 }
 0x19d   : > { %642 = vmatmul.bf16.gmra.mxu1 %v1641_v10 }
 0x1ad   : > { %647 = vmatmul.bf16.gmra.mxu1 %v1645_v11 }
 0x1bd   : > { %652 = vmatmul.bf16.gmra.mxu1 %v1649_v12 }
 0x1cd   : > { %657 = vmatmul.bf16.gmra.mxu1 %v1653_v13 }
 0x1dd   : > { %662 = vmatmul.bf16.gmra.mxu1 %v1657_v14 }
 0x1ed   : > { %667 = vmatmul.bf16.gmra.mxu1 %v1661_v15 }
 0x1fa   : > { %v633_v17 = vpop.f32.mrf.mxu1 }
 0x1fb   : > { %v634_v18 = vadd.f32 %v1667_v16, %v633_v17 }
 0x1fd   : > { %v673_v19 = vmax.f32 %v634_v18, 0.0 }
 0x1ff   : > { %v689_v22 = vpack.c.bf16 %v673_v19, %v673_v19 }
 0x201   : > { %v721_v25 = vunpack.c.l.b16 %v689_v22 }
 0x202   : > { %v635_v20 = vpop.f32.mrf.mxu1 }
 0x203   : > { %v636_v21 = vadd.f32 %v1667_v16, %v635_v20 }
 0x205   : > { %v674_v23 = vmax.f32 %v636_v21, 0.0 }
 0x207   : > { %v690_v24 = vpack.c.bf16 %v674_v23, %v674_v23 }
 0x209   : > { %v722_v26 = vunpack.c.l.b16 %v690_v24 }
 0x20a   : > { %v638_v27 = vpop.f32.mrf.mxu1 }
 0x20b   : > { %v1671_v28 = vpack.c.b16 %v722_v26, %v721_v25  ;;  %v639_v29 = vadd.f32 %v1667_v16, %v638_v27 }
 0x20d   : > { %v675_v30 = vmax.f32 %v639_v29, 0.0 }
 0x20f   : > { %v691_v33 = vpack.c.bf16 %v675_v30, %v675_v30 }
 0x211   : > { %v723_v36 = vunpack.c.l.b16 %v691_v33 }
 0x212   : > { %v640_v31 = vpop.f32.mrf.mxu1 }
 0x213   : > { %v641_v32 = vadd.f32 %v1667_v16, %v640_v31 }
 0x215   : > { %v676_v34 = vmax.f32 %v641_v32, 0.0 }
 0x217   : > { %v692_v35 = vpack.c.bf16 %v676_v34, %v676_v34 }
 0x219   : > { %v724_v37 = vunpack.c.l.b16 %v692_v35 }
 0x21a   : > { %v643_v38 = vpop.f32.mrf.mxu1 }
 0x21b   : > { %v1675_v39 = vpack.c.b16 %v724_v37, %v723_v36  ;;  %v644_v40 = vadd.f32 %v1667_v16, %v643_v38 }
 0x21d   : > { %v677_v41 = vmax.f32 %v644_v40, 0.0 }
 0x21f   : > { %v693_v44 = vpack.c.bf16 %v677_v41, %v677_v41 }
 0x221   : > { %v725_v47 = vunpack.c.l.b16 %v693_v44 }
 0x222   : > { %v645_v42 = vpop.f32.mrf.mxu1 }
 0x223   : > { %v646_v43 = vadd.f32 %v1667_v16, %v645_v42 }
 0x225   : > { %v678_v45 = vmax.f32 %v646_v43, 0.0 }
 0x227   : > { %v694_v46 = vpack.c.bf16 %v678_v45, %v678_v45 }
 0x229   : > { %v726_v48 = vunpack.c.l.b16 %v694_v46 }
 0x22a   : > { %v648_v49 = vpop.f32.mrf.mxu1 }
 0x22b   : > { %v739_v50 = vpack.c.b16 %v726_v48, %v725_v47  ;;  %v649_v51 = vadd.f32 %v1667_v16, %v648_v49 }
 0x22d   : > { %v679_v52 = vmax.f32 %v649_v51, 0.0 }
 0x22f   : > { %v695_v55 = vpack.c.bf16 %v679_v52, %v679_v52 }
 0x231   : > { %v727_v58 = vunpack.c.l.b16 %v695_v55 }
 0x232   : > { %v650_v53 = vpop.f32.mrf.mxu1 }
 0x233   : > { %v651_v54 = vadd.f32 %v1667_v16, %v650_v53 }
 0x235   : > { %v680_v56 = vmax.f32 %v651_v54, 0.0 }
 0x237   : > { %v696_v57 = vpack.c.bf16 %v680_v56, %v680_v56 }
 0x239   : > { %v728_v59 = vunpack.c.l.b16 %v696_v57 }
 0x23a   : > { %v653_v60 = vpop.f32.mrf.mxu1 }
 0x23b   : > { %v740_v61 = vpack.c.b16 %v728_v59, %v727_v58  ;;  %v654_v30 = vadd.f32 %v1667_v16, %v653_v60 }
 0x23d   : > { %v681_v40 = vmax.f32 %v654_v30, 0.0 }
 0x23f   : > { %v697_v46 = vpack.c.bf16 %v681_v40, %v681_v40 }
 0x241   : > { %v729_v49 = vunpack.c.l.b16 %v697_v46 }
 0x242   : > { %v655_v62 = vpop.f32.mrf.mxu1 }
 0x243   : > { %v656_v25 = vadd.f32 %v1667_v16, %v655_v62 }
 0x245   : > { %v682_v35 = vmax.f32 %v656_v25, 0.0 }
 0x247   : > { %v698_v43 = vpack.c.bf16 %v682_v35, %v682_v35 }
 0x249   : > { %v730_v48 = vunpack.c.l.b16 %v698_v43 }
 0x24a   : > { %v658_v63 = vpop.f32.mrf.mxu1 }
 0x24b   : > { %v659_v21 = vadd.f32 %v1667_v16, %v658_v63  ;;  %v741_v51 = vpack.c.b16 %v730_v48, %v729_v49 }
 0x24d   : > { %v683_v31 = vmax.f32 %v659_v21, 0.0 }
 0x24f   : > { %v699_v41 = vpack.c.bf16 %v683_v31, %v683_v31 }
 0x251   : > { %v731_v47 = vunpack.c.l.b16 %v699_v41 }
 0x252   : > { %v660_v0 = vpop.f32.mrf.mxu1 }
 0x253   : > { %v661_v18 = vadd.f32 %v1667_v16, %v660_v0 }
 0x255   : > { %v684_v26 = vmax.f32 %v661_v18, 0.0 }
 0x257   : > { %v700_v36 = vpack.c.bf16 %v684_v26, %v684_v26 }
 0x259   : > { %v732_v44 = vunpack.c.l.b16 %v700_v36 }
 0x25a   : > { %v663_v1 = vpop.f32.mrf.mxu1 }
 0x25b   : > { %v664_v6 = vadd.f32 %v1667_v16, %v663_v1 }
 0x25d   : > { %v685_v22 = vmax.f32 %v664_v6, 0.0 }
 0x25f   : > { %v701_v32 = vpack.c.bf16 %v685_v22, %v685_v22 }
 0x261   : > { %v733_v42 = vunpack.c.l.b16 %v701_v32 }
 0x262   : > { %v665_v2 = vpop.f32.mrf.mxu1 }
 0x263   : > { %v666_v5 = vadd.f32 %v1667_v16, %v665_v2 }
 0x265   : > { %v686_v19 = vmax.f32 %v666_v5, 0.0  ;;  %v1289_v5 = vld [vmem:[%s1780_s5] ss:$0 sm:$0xff] }
 0x267   : > { %v702_v27 = vpack.c.bf16 %v686_v19, %v686_v19 }
 0x269   : > { %v734_v37 = vunpack.c.l.b16 %v702_v27 }
 0x26a   : > { %v668_v3 = vpop.f32.mrf.mxu1 }
 0x26b   : > { %v669_v4 = vadd.f32 %v1667_v16, %v668_v3  ;;  %v743_v45 = vpack.c.b16 %v734_v37, %v733_v42 }
 0x26d   : > { %v687_v7 = vmax.f32 %v669_v4, 0.0 }
 0x26f   : > { %v703_v23 = vpack.c.bf16 %v687_v7, %v687_v7 }
 0x271   : > { %v735_v33 = vunpack.c.l.b16 %v703_v23 }
 0x272   : > { %v670_v17 = vpop.f32.mrf.mxu1 }
 0x273   : > { %v671_v20 = vadd.f32 %v1667_v16, %v670_v17  ;;  %v742_v16 = vpack.c.b16 %v732_v44, %v731_v47 }
 0x275   : > { %v688_v24 = vmax.f32 %v671_v20, 0.0 }
 0x277   : > { %v704_v29 = vpack.c.bf16 %v688_v24, %v688_v24 }
 0x279   : > { %v736_v34 = vunpack.c.l.b16 %v704_v29 }
 0x27b   : > { %v744_v38 = vpack.c.b16 %v736_v34, %v735_v33 }
 0x27d   : > { %753 = vmatpush.bf16.msra.mxu2 %v744_v38 }
 0x281   : > { %754 = vmatpush.bf16.msra.mxu2 %v743_v45 }
 0x285   : > { %755 = vmatpush.bf16.msra.mxu2 %v742_v16 }
 0x289   : > { %756 = vmatpush.bf16.msra.mxu2 %v741_v51 }
 0x28d   : > { %757 = vmatpush.bf16.msra.mxu2 %v740_v61 }
 0x291   : > { %758 = vmatpush.bf16.msra.mxu2 %v739_v50  ;;  %v1231_v50 = vld [vmem:[%s1779_s4 + $0x18] sm:$0xff] }
 0x292   : > { %871 = vmatpush.bf16.msra.mxu3 %v1231_v50 }
 0x295   : > { %759 = vmatpush.bf16.msra.mxu2 %v1675_v39 }
 0x299   : > { %760 = vmatpush.bf16.msra.mxu2 %v1671_v28 }
 0x29c   : > { %761 = vmatmul.bf16.vlgmr.msra.gmra.mxu2 %v1633_v8  ;;  %v1230_v8 = vld [vmem:[%s1779_s4 + $0x10] sm:$0xff] }
 0x29d   : > { %872 = vmatpush.bf16.msra.mxu3 %v1230_v8 }
 0x2ac   : > { %766 = vmatmul.bf16.gmra.mxu2 %v1637_v9  ;;  %v1229_v9 = vld [vmem:[%s1779_s4 + $0x8] sm:$0xff] }
 0x2ad   : > { %873 = vmatpush.bf16.msra.mxu3 %v1229_v9 }
 0x2bc   : > { %771 = vmatmul.bf16.gmra.mxu2 %v1641_v10  ;;  %v1228_v10 = vld [vmem:[%s1779_s4] sm:$0xff] }
 0x2bd   : > { %874 = vmatpush.bf16.msra.mxu3 %v1228_v10 }
 0x2cc   : > { %776 = vmatmul.bf16.gmra.mxu2 %v1645_v11 }
 0x2dc   : > { %781 = vmatmul.bf16.gmra.mxu2 %v1649_v12 }
 0x2ec   : > { %786 = vmatmul.bf16.gmra.mxu2 %v1653_v13 }
 0x2fc   : > { %791 = vmatmul.bf16.gmra.mxu2 %v1657_v14 }
 0x30c   : > { %796 = vmatmul.bf16.gmra.mxu2 %v1661_v15 }
 0x31f   : > { %v762_v11 = vpop.f32.mrf.mxu2 }
 0x327   : > { %v764_v12 = vpop.f32.mrf.mxu2 }
 0x328   : > { %v802_v13 = vpack.c.bf16 %v764_v12, %v762_v11 }
 0x32a   : > { %1189 = vmatmul.msk.bf16.vlgmr.msra.gmra.mxu3 %vm842_vm0, %v802_v13 }
 0x32f   : > { %v767_v14 = vpop.f32.mrf.mxu2 }
 0x337   : > { %v769_v28 = vpop.f32.mrf.mxu2 }
 0x338   : > { %v803_v39 = vpack.c.bf16 %v769_v28, %v767_v14 }
 0x33a   : > { %1190 = vmatmul.msk.bf16.gmra.mxu3 %vm842_vm0, %v803_v39 }
 0x33f   : > { %v772_v52 = vpop.f32.mrf.mxu2 }
 0x347   : > { %v774_v53 = vpop.f32.mrf.mxu2 }
 0x348   : > { %v804_v54 = vpack.c.bf16 %v774_v53, %v772_v52 }
 0x34a   : > { %1191 = vmatmul.msk.bf16.gmra.mxu3 %vm842_vm0, %v804_v54 }
 0x34f   : > { %v777_v55 = vpop.f32.mrf.mxu2 }
 0x357   : > { %v779_v56 = vpop.f32.mrf.mxu2 }
 0x358   : > { %v805_v57 = vpack.c.bf16 %v779_v56, %v777_v55 }
 0x35a   : > { %1192 = vmatmul.msk.bf16.gmra.mxu3 %vm842_vm0, %v805_v57 }
 0x35f   : > { %v782_v15 = vpop.f32.mrf.mxu2 }
 0x367   : > { %v784_v58 = vpop.f32.mrf.mxu2 }
 0x368   : > { %v806_v59 = vpack.c.bf16 %v784_v58, %v782_v15 }
 0x36a   : > { %1193 = vmatmul.msk.bf16.gmra.mxu3 %vm842_vm0, %v806_v59 }
 0x36f   : > { %v787_v60 = vpop.f32.mrf.mxu2 }
 0x377   : > { %v789_v61 = vpop.f32.mrf.mxu2 }
 0x378   : > { %v807_v62 = vpack.c.bf16 %v789_v61, %v787_v60 }
 0x37a   : > { %1194 = vmatmul.msk.bf16.gmra.mxu3 %vm842_vm0, %v807_v62 }
 0x37f   : > { %v792_v63 = vpop.f32.mrf.mxu2 }
 0x387   : > { %v794_v0 = vpop.f32.mrf.mxu2 }
 0x388   : > { %v808_v1 = vpack.c.bf16 %v794_v0, %v792_v63 }
 0x38a   : > { %1195 = vmatmul.msk.bf16.gmra.mxu3 %vm842_vm0, %v808_v1 }
 0x38f   : > { %v797_v2 = vpop.f32.mrf.mxu2 }
 0x397   : > { %v799_v3 = vpop.f32.mrf.mxu2 }
 0x398   : > { %v809_v4 = vpack.c.bf16 %v799_v3, %v797_v2 }
 0x39a   : > { %1196 = vmatmul.msk.bf16.gmra.mxu3 %vm842_vm0, %v809_v4 }
 0x3ad   : > { %v876_v6 = vpop.f32.mrf.mxu3 }
 0x3ae   : > { %v920_v7 = vadd.f32 %v1289_v5, %v876_v6 }
 0x3b0   : > { %936 = vst [vmem:[%s1723_s28] sm:$0xff] %v920_v7 }
 0x3b5   : > { %v878_v17 = vpop.f32.mrf.mxu3 }
 0x3b6   : > { %v921_v18 = vadd.f32 %v1289_v5, %v878_v17 }
 0x3b8   : > { %937 = vst [vmem:[%s1723_s28 + $0x8] sm:$0xff] %v921_v18 }
 0x3bd   : > { %v881_v19 = vpop.f32.mrf.mxu3 }
 0x3be   : > { %v922_v20 = vadd.f32 %v1289_v5, %v881_v19 }
 0x3c0   : > { %938 = vst [vmem:[%s1723_s28 + $0x10] sm:$0xff] %v922_v20 }
 0x3c5   : > { %v883_v21 = vpop.f32.mrf.mxu3 }
 0x3c6   : > { %v923_v22 = vadd.f32 %v1289_v5, %v883_v21 }
 0x3c8   : > { %939 = vst [vmem:[%s1723_s28 + $0x18] sm:$0xff] %v923_v22 }
 0x3cd   : > { %v886_v23 = vpop.f32.mrf.mxu3 }
 0x3ce   : > { %v924_v24 = vadd.f32 %v1289_v5, %v886_v23 }
 0x3d0   : > { %940 = vst [vmem:[%s1723_s28 + $0x20] sm:$0xff] %v924_v24 }
 0x3d5   : > { %v888_v25 = vpop.f32.mrf.mxu3 }
 0x3d6   : > { %v925_v26 = vadd.f32 %v1289_v5, %v888_v25 }
 0x3d8   : > { %941 = vst [vmem:[%s1723_s28 + $0x28] sm:$0xff] %v925_v26 }
 0x3dd   : > { %v891_v27 = vpop.f32.mrf.mxu3 }
 0x3de   : > { %v926_v29 = vadd.f32 %v1289_v5, %v891_v27 }
 0x3e0   : > { %942 = vst [vmem:[%s1723_s28 + $0x30] sm:$0xff] %v926_v29 }
 0x3e5   : > { %v893_v30 = vpop.f32.mrf.mxu3 }
 0x3e6   : > { %v927_v31 = vadd.f32 %v1289_v5, %v893_v30 }
 0x3e8   : > { %943 = vst [vmem:[%s1723_s28 + $0x38] sm:$0xff] %v927_v31 }
 0x3ed   : > { %v896_v32 = vpop.f32.mrf.mxu3 }
 0x3ee   : > { %v928_v33 = vadd.f32 %v1289_v5, %v896_v32 }
 0x3f0   : > { %944 = vst [vmem:[%s1723_s28 + $0x40] sm:$0xff] %v928_v33 }
 0x3f5   : > { %v898_v34 = vpop.f32.mrf.mxu3 }
 0x3f6   : > { %v929_v35 = vadd.f32 %v1289_v5, %v898_v34 }
 0x3f8   : > { %945 = vst [vmem:[%s1723_s28 + $0x48] sm:$0xff] %v929_v35 }
 0x3fd   : > { %v901_v36 = vpop.f32.mrf.mxu3 }
 0x3fe   : > { %v930_v37 = vadd.f32 %v1289_v5, %v901_v36 }
 0x400   : > { %946 = vst [vmem:[%s1723_s28 + $0x50] sm:$0xff] %v930_v37 }
 0x405   : > { %v903_v38 = vpop.f32.mrf.mxu3 }
 0x406   : > { %v931_v40 = vadd.f32 %v1289_v5, %v903_v38 }
 0x408   : > { %947 = vst [vmem:[%s1723_s28 + $0x58] sm:$0xff] %v931_v40 }
 0x40d   : > { %v906_v41 = vpop.f32.mrf.mxu3 }
 0x40e   : > { %v932_v42 = vadd.f32 %v1289_v5, %v906_v41 }
 0x410   : > { %948 = vst [vmem:[%s1723_s28 + $0x60] sm:$0xff] %v932_v42 }
 0x415   : > { %v908_v43 = vpop.f32.mrf.mxu3 }
 0x416   : > { %v933_v44 = vadd.f32 %v1289_v5, %v908_v43 }
 0x418   : > { %949 = vst [vmem:[%s1723_s28 + $0x68] sm:$0xff] %v933_v44 }
 0x41d   : > { %v911_v45 = vpop.f32.mrf.mxu3 }
 0x41e   : > { %v934_v46 = vadd.f32 %v1289_v5, %v911_v45 }
 0x420   : > { %950 = vst [vmem:[%s1723_s28 + $0x70] sm:$0xff] %v934_v46 }
 0x425   : > { %v913_v47 = vpop.f32.mrf.mxu3 }
 0x426   : > { %v935_v48 = vadd.f32 %v1289_v5, %v913_v47 }
 0x428   : > { %951 = vst [vmem:[%s1723_s28 + $0x78] sm:$0xff] %v935_v48 }
 0x429   : > { %1377 = shalt.err (!%p1374_p0)
}
 0x42a   : > { %s1424_s0 = smov 128   ;;  %s1425_s17 = smov 8  }
 0x42b   : > { %1237 = dma.vmem_to_hbm [thread:$0]  (%p1511_p11), %s966_s27, 2048, %s968_s30, %s953_s18, %s1424_s0, %s1424_s0, %s1425_s17  }
 0x42c PF: > { %s982_s19 = sand.u32 1, %s1408_s21   ;;  %p1800_p1 = scmp.ge.s32.totalorder %s1420_s24, 2 }
 0x42d   : > { %s983_s26 = scalar_lea.sflag [#allocation4], %s982_s19 }
 0x42e   : > { %p1247_p4 = pnand %p1800_p1, %p1515_p12 }
 0x430   : > { %p1248_p7 = pneg %p1247_p4 }
 0x432   : > { %1403 = dma.done.wait (%p1248_p7), %s983_s26, 2048  }
 0x433   : > { %1405 = vsyncadd (%p1248_p7), %s983_s26, 4294965248  ;;  %s1801_s24 = sld [smem:[#allocation12_spill]]  ;;  %s1804_s21 = smov %s1412_s22 }
 0x434   : > { %s1802_s29 = sld [smem:[#allocation11_spill]] }
 0x435   : > { %s1803_s23 = sld [smem:[#allocation13_spill]] }
 0x439   : > { %p22_p5 = scmp.ge.s32.totalorder %s1801_s24, 4  }
 0x43a   : > { %s1805_s22 = smov %s1802_s29 }
 0x43b   :  { %24 = sbr.rel (!%p22_p5) target bundleno = 9 (0x9), region = 102 }
 0x440   :  { %989 = vsyncpa [#allocation3], 1 }
 0x441   :  { %991 = vsyncpa [#allocation3 + $0x1], 1 }
 0x442   :  { %992 = vsyncpa [#allocation6], 1 }
 0x443   :  { %994 = vsyncpa [#allocation6 + $0x1], 1 }
 0x444   :  { %995 = vsyncpa [#allocation4], 1 }
 0x445   :  { %997 = vsyncpa [#allocation4 + $0x1], 1 }

</bundles_post_ra>
